<compile_context>
chip_gen: v5e
topology: v5e:2x2
jax: 0.10.0
libtpu: 0.0.40
codegen_flags: <defaults>
</compile_context>

<pallas_src>
import functools

import jax
import jax.numpy as jnp
from jax import lax
from jax.experimental import pallas as pl
from jax.experimental.pallas import tpu as pltpu

K = 7             # conv kernel size
P = (K - 1) // 2  # padding = 3


def _conv_band_matrix(conv_w, W):
    """M[(c*K+di)*W + wp, w] = conv_w[0, c, di, wp - w + P] if 0 <= wp-w+P < K else 0.

    Carries the W-direction conv taps AND the W-direction zero padding, so the kernel only
    needs H-direction shifts (static sublane slices) before a single matmul.
    """
    w3 = conv_w.reshape(2, K, K).astype(jnp.float32)          # (2, K_di, K_dj)
    wp = jnp.arange(W)[:, None]                               # source column
    wo = jnp.arange(W)[None, :]                               # output column
    dj = wp - wo + P                                          # (W, W)
    valid = (dj >= 0) & (dj < K)
    djc = jnp.clip(dj, 0, K - 1)
    band = jnp.where(valid[None, None], w3[:, :, djc], 0.0)   # (2, K, W, W)
    return band.reshape(2 * K * W, W)


def _spatial_gate_kernel(bn_ref, m_ref, x_ref, o_ref, pool_ref, *, H, W):
    nb = x_ref.shape[0]
    M = m_ref[...]                                 # (2*K*W, W) banded conv matrix (VMEM)
    bn_scale = bn_ref[0]                           # folded BN scale (SMEM scalar)
    bn_shift = bn_ref[1]                           # folded BN shift (SMEM scalar)

    # Zero the scratch once per step; the H-direction halo rows stay zero (conv padding).
    pool_ref[...] = jnp.zeros_like(pool_ref)

    for b in range(nb):                            # static unroll over the per-step batch
        x = x_ref[b].astype(jnp.float32)           # (C, H*W), lane-dense load

        # --- ChannelPool: max / mean over C (sublane reduction on full-lane data) ---
        cmax = jnp.max(x, axis=0, keepdims=True)   # (1, H*W)
        cmean = jnp.mean(x, axis=0, keepdims=True) # (1, H*W)
        pooled = jnp.concatenate([cmax, cmean], axis=0)   # (2, H*W)

        # Relayout ONLY the two small pooled maps into (2, H, W), sublane-padded by P.
        for h in range(H):
            pool_ref[:, P + h, :] = pooled[:, h * W:(h + 1) * W]

        # --- 7x7 conv as one MXU matmul: H-direction im2col (14 static slices) @ M ---
        cols = [pool_ref[c, di:di + H, :] for c in range(2) for di in range(K)]
        L = jnp.concatenate(cols, axis=-1)                           # (H, 2*K*W)
        conv = jnp.dot(L, M, preferred_element_type=jnp.float32)     # (H, W)

        # --- BatchNorm (eval, folded) + sigmoid gate ---
        y = conv * bn_scale + bn_shift
        gate = pl.reciprocal(1.0 + jnp.exp(-y))    # exp on EUP; exact recip for accuracy

        # Flatten the small (H, W) gate back to (1, H*W) and apply with one
        # full-lane-width multiply + store.
        gate_flat = jnp.concatenate([gate[h:h + 1, :] for h in range(H)], axis=1)
        o_ref[b] = (x * gate_flat).astype(o_ref.dtype)


def _pick_batch_block(N, C, HW, itemsize, max_tile_bytes=4 << 20):
    """Largest divisor of N that keeps >= 2 grid steps when N >= 2 (v7x megacore)
    and keeps the per-step tile under max_tile_bytes (VMEM double-buffer headroom)."""
    cap = max(1, N // 2) if N >= 2 else 1
    best = 1
    for d in range(1, N + 1):
        if N % d == 0 and d <= cap and d * C * HW * itemsize <= max_tile_bytes:
            best = d
    return best


def spatial_gate(x, conv_w, bn_gamma, bn_beta, bn_mean, bn_var, eps=1e-5):
    """x: (N, C, H, W). conv_w: (1, 2, 7, 7). BatchNorm in eval mode (running stats)."""
    N, C, H, W = x.shape
    HW = H * W

    # Fold BN (eval semantics) into an affine scale/shift on the conv output.
    bn_scale = bn_gamma / jnp.sqrt(bn_var + eps)
    bn_shift = bn_beta - bn_mean * bn_scale
    bn_params = jnp.stack([bn_scale[0], bn_shift[0]]).astype(jnp.float32)   # (2,)

    m_mat = _conv_band_matrix(conv_w, W)           # (2*K*W, W)

    nb = _pick_batch_block(N, C, HW, x.dtype.itemsize)
    grid = (N // nb,)

    # TODO(synk): for very large C*H*W tiles a further C-split (pool-reduce pass + apply
    # pass) would be needed to fit v7x's 64 MiB VMEM; not required at these shapes.
    x2 = x.reshape(N, C, HW)                       # lane-dense view (free, row-major)

    out2 = pl.pallas_call(
        functools.partial(_spatial_gate_kernel, H=H, W=W),
        out_shape=jax.ShapeDtypeStruct((N, C, HW), x.dtype),
        grid=grid,
        in_specs=[
            pl.BlockSpec(memory_space=pltpu.MemorySpace.SMEM),        # folded BN (2,)
            pl.BlockSpec((2 * K * W, W), lambda n: (0, 0)),           # conv band matrix
            pl.BlockSpec((nb, C, HW), lambda n: (n, 0, 0)),           # x tile (lane-dense)
        ],
        out_specs=pl.BlockSpec((nb, C, HW), lambda n: (n, 0, 0)),
        scratch_shapes=[pltpu.VMEM((2, H + 2 * P, W), jnp.float32)],  # padded pooled maps
        compiler_params=pltpu.CompilerParams(
            dimension_semantics=("parallel",),
            vmem_limit_bytes=32 * 1024 * 1024,    # raise v5e's 16 MiB default scoped VMEM
        ),
    )(bn_params, m_mat, x2)

    return out2.reshape(N, C, H, W)


def _reference(x, conv_w, bn_gamma, bn_beta, bn_mean, bn_var, eps=1e-5):
    """Pure-JAX reference mirroring the PyTorch forward (BN in eval mode)."""
    cmax = jnp.max(x, axis=1, keepdims=True)
    cmean = jnp.mean(x, axis=1, keepdims=True)
    pooled = jnp.concatenate([cmax, cmean], axis=1)                   # (N, 2, H, W)
    conv = lax.conv_general_dilated(
        pooled, conv_w, window_strides=(1, 1), padding=((P, P), (P, P)),
        dimension_numbers=("NCHW", "OIHW", "NCHW"))
    bn = (conv - bn_mean.reshape(1, -1, 1, 1)) / jnp.sqrt(
        bn_var.reshape(1, -1, 1, 1) + eps) * bn_gamma.reshape(1, -1, 1, 1) + \
        bn_beta.reshape(1, -1, 1, 1)
    return x * jax.nn.sigmoid(bn)


if __name__ == "__main__":
    key = jax.random.PRNGKey(0)
    kx, kw = jax.random.split(key)

    N, C, H, W = 2, 4, 16, 16
    x = jax.random.normal(kx, (N, C, H, W), dtype=jnp.float32)

    # Deterministic synthetic parameters (shapes from the module __init__).
    fan_in = 2 * K * K
    conv_w = jax.random.normal(kw, (1, 2, K, K), dtype=jnp.float32) * (2.0 / fan_in) ** 0.5
    bn_gamma = jnp.full((1,), 1.3, jnp.float32)
    bn_beta = jnp.full((1,), 0.1, jnp.float32)
    bn_mean = jnp.full((1,), 0.05, jnp.float32)
    bn_var = jnp.full((1,), 0.9, jnp.float32)

    out = spatial_gate(x, conv_w, bn_gamma, bn_beta, bn_mean, bn_var)
    out = jax.block_until_ready(out)

    ref = _reference(x, conv_w, bn_gamma, bn_beta, bn_mean, bn_var)
    assert out.shape == (N, C, H, W)
    # 1e-3 tolerance: the kernel's conv runs on the MXU (different accumulation order /
    # internal passes than the XLA conv used by the reference).
    err = float(jnp.max(jnp.abs(out - ref)))
    assert err < 1e-3, f"mismatch vs reference: {err}"

    print("KERNEL_OK")
</pallas_src>

<mosaic_0001>
module attributes {stable_mosaic.version = 11 : i64} {
  func.func @_spatial_gate_kernel(%arg0: i32, %arg1: memref<2xf32, #tpu.memory_space<smem>>, %arg2: memref<224x16xf32, #tpu.memory_space<vmem>>, %arg3: memref<1x4x256xf32, #tpu.memory_space<vmem>>, %arg4: memref<1x4x256xf32, #tpu.memory_space<vmem>>, %arg5: memref<2x22x16xf32, #tpu.memory_space<vmem>>) attributes {dimension_semantics = [#tpu.dimension_semantics<parallel>], iteration_bounds = array<i64: 2>, scalar_prefetch = 0 : i64, scratch_operands = 1 : i64, tpu.core_type = #tpu.core_type<tc>, window_params = [{transform_indices = @transform_0, window_bounds = array<i64: 2>}, {pipeline_mode = #tpu.pipeline_mode<synchronous>, transform_indices = @transform_1, window_bounds = array<i64: 224, 16>}, {transform_indices = @transform_2, window_bounds = array<i64: 1, 4, 256>}, {transform_indices = @transform_3, window_bounds = array<i64: 1, 4, 256>}]} {
    %c0 = arith.constant 0 : index
    %c0_0 = arith.constant 0 : index
    %0 = vector.load %arg2[%c0, %c0_0] : memref<224x16xf32, #tpu.memory_space<vmem>>, vector<224x16xf32>
    %c0_1 = arith.constant 0 : index
    %1 = memref.load %arg1[%c0_1] : memref<2xf32, #tpu.memory_space<smem>>
    %c1 = arith.constant 1 : index
    %2 = memref.load %arg1[%c1] : memref<2xf32, #tpu.memory_space<smem>>
    %cst = arith.constant 0.000000e+00 : f32
    %3 = vector.broadcast %cst : f32 to vector<2x22x16xf32>
    %c0_2 = arith.constant 0 : index
    %c0_3 = arith.constant 0 : index
    %c0_4 = arith.constant 0 : index
    %4 = vector.load %arg5[%c0_2, %c0_3, %c0_4] : memref<2x22x16xf32, #tpu.memory_space<vmem>>, vector<2x22x16xf32>
    tpu.vector_store %arg5[%c0_2, %c0_3, %c0_4], %3 {strides = array<i32>} : memref<2x22x16xf32, #tpu.memory_space<vmem>>, vector<2x22x16xf32>,
    %c0_5 = arith.constant 0 : index
    %c0_6 = arith.constant 0 : index
    %c0_7 = arith.constant 0 : index
    %5 = vector.load %arg3[%c0_5, %c0_6, %c0_7] : memref<1x4x256xf32, #tpu.memory_space<vmem>>, vector<1x4x256xf32>
    %6 = vector.shape_cast %5 : vector<1x4x256xf32> to vector<4x256xf32>
    %cst_8 = arith.constant dense<0xFF800000> : vector<256xf32>
    %7 = vector.multi_reduction <maximumf>, %6, %cst_8 [0] : vector<4x256xf32> to vector<256xf32>
    %8 = vector.shape_cast %7 : vector<256xf32> to vector<1x256xf32>
    %cst_9 = arith.constant dense<0.000000e+00> : vector<256xf32>
    %9 = vector.multi_reduction <add>, %6, %cst_9 [0] : vector<4x256xf32> to vector<256xf32>
    %10 = vector.shape_cast %9 : vector<256xf32> to vector<1x256xf32>
    %cst_10 = arith.constant 4.000000e+00 : f32
    %11 = vector.broadcast %cst_10 : f32 to vector<1x256xf32>
    %12 = arith.divf %10, %11 : vector<1x256xf32>
    %13 = tpu.concatenate %8, %12 in 0 : vector<1x256xf32>, vector<1x256xf32> -> vector<2x256xf32>
    %14 = vector.extract_strided_slice %13 {offsets = [0, 0], sizes = [2, 16], strides = [1, 1]} : vector<2x256xf32> to vector<2x16xf32>
    %c0_11 = arith.constant 0 : index
    %c3 = arith.constant 3 : index
    %c0_12 = arith.constant 0 : index
    %15 = vector.load %arg5[%c0_11, %c3, %c0_12] : memref<2x22x16xf32, #tpu.memory_space<vmem>>, vector<2x1x16xf32>
    %16 = vector.shape_cast %15 : vector<2x1x16xf32> to vector<2x16xf32>
    %17 = vector.shape_cast %14 : vector<2x16xf32> to vector<2x1x16xf32>
    tpu.vector_store %arg5[%c0_11, %c3, %c0_12], %17 {strides = array<i32>} : memref<2x22x16xf32, #tpu.memory_space<vmem>>, vector<2x1x16xf32>,
    %18 = vector.extract_strided_slice %13 {offsets = [0, 16], sizes = [2, 16], strides = [1, 1]} : vector<2x256xf32> to vector<2x16xf32>
    %c0_13 = arith.constant 0 : index
    %c4 = arith.constant 4 : index
    %c0_14 = arith.constant 0 : index
    %19 = vector.load %arg5[%c0_13, %c4, %c0_14] : memref<2x22x16xf32, #tpu.memory_space<vmem>>, vector<2x1x16xf32>
    %20 = vector.shape_cast %19 : vector<2x1x16xf32> to vector<2x16xf32>
    %21 = vector.shape_cast %18 : vector<2x16xf32> to vector<2x1x16xf32>
    tpu.vector_store %arg5[%c0_13, %c4, %c0_14], %21 {strides = array<i32>} : memref<2x22x16xf32, #tpu.memory_space<vmem>>, vector<2x1x16xf32>,
    %22 = vector.extract_strided_slice %13 {offsets = [0, 32], sizes = [2, 16], strides = [1, 1]} : vector<2x256xf32> to vector<2x16xf32>
    %c0_15 = arith.constant 0 : index
    %c5 = arith.constant 5 : index
    %c0_16 = arith.constant 0 : index
    %23 = vector.load %arg5[%c0_15, %c5, %c0_16] : memref<2x22x16xf32, #tpu.memory_space<vmem>>, vector<2x1x16xf32>
    %24 = vector.shape_cast %23 : vector<2x1x16xf32> to vector<2x16xf32>
    %25 = vector.shape_cast %22 : vector<2x16xf32> to vector<2x1x16xf32>
    tpu.vector_store %arg5[%c0_15, %c5, %c0_16], %25 {strides = array<i32>} : memref<2x22x16xf32, #tpu.memory_space<vmem>>, vector<2x1x16xf32>,
    %26 = vector.extract_strided_slice %13 {offsets = [0, 48], sizes = [2, 16], strides = [1, 1]} : vector<2x256xf32> to vector<2x16xf32>
    %c0_17 = arith.constant 0 : index
    %c6 = arith.constant 6 : index
    %c0_18 = arith.constant 0 : index
    %27 = vector.load %arg5[%c0_17, %c6, %c0_18] : memref<2x22x16xf32, #tpu.memory_space<vmem>>, vector<2x1x16xf32>
    %28 = vector.shape_cast %27 : vector<2x1x16xf32> to vector<2x16xf32>
    %29 = vector.shape_cast %26 : vector<2x16xf32> to vector<2x1x16xf32>
    tpu.vector_store %arg5[%c0_17, %c6, %c0_18], %29 {strides = array<i32>} : memref<2x22x16xf32, #tpu.memory_space<vmem>>, vector<2x1x16xf32>,
    %30 = vector.extract_strided_slice %13 {offsets = [0, 64], sizes = [2, 16], strides = [1, 1]} : vector<2x256xf32> to vector<2x16xf32>
    %c0_19 = arith.constant 0 : index
    %c7 = arith.constant 7 : index
    %c0_20 = arith.constant 0 : index
    %31 = vector.load %arg5[%c0_19, %c7, %c0_20] : memref<2x22x16xf32, #tpu.memory_space<vmem>>, vector<2x1x16xf32>
    %32 = vector.shape_cast %31 : vector<2x1x16xf32> to vector<2x16xf32>
    %33 = vector.shape_cast %30 : vector<2x16xf32> to vector<2x1x16xf32>
    tpu.vector_store %arg5[%c0_19, %c7, %c0_20], %33 {strides = array<i32>} : memref<2x22x16xf32, #tpu.memory_space<vmem>>, vector<2x1x16xf32>,
    %34 = vector.extract_strided_slice %13 {offsets = [0, 80], sizes = [2, 16], strides = [1, 1]} : vector<2x256xf32> to vector<2x16xf32>
    %c0_21 = arith.constant 0 : index
    %c8 = arith.constant 8 : index
    %c0_22 = arith.constant 0 : index
    %35 = vector.load %arg5[%c0_21, %c8, %c0_22] : memref<2x22x16xf32, #tpu.memory_space<vmem>>, vector<2x1x16xf32>
    %36 = vector.shape_cast %35 : vector<2x1x16xf32> to vector<2x16xf32>
    %37 = vector.shape_cast %34 : vector<2x16xf32> to vector<2x1x16xf32>
    tpu.vector_store %arg5[%c0_21, %c8, %c0_22], %37 {strides = array<i32>} : memref<2x22x16xf32, #tpu.memory_space<vmem>>, vector<2x1x16xf32>,
    %38 = vector.extract_strided_slice %13 {offsets = [0, 96], sizes = [2, 16], strides = [1, 1]} : vector<2x256xf32> to vector<2x16xf32>
    %c0_23 = arith.constant 0 : index
    %c9 = arith.constant 9 : index
    %c0_24 = arith.constant 0 : index
    %39 = vector.load %arg5[%c0_23, %c9, %c0_24] : memref<2x22x16xf32, #tpu.memory_space<vmem>>, vector<2x1x16xf32>
    %40 = vector.shape_cast %39 : vector<2x1x16xf32> to vector<2x16xf32>
    %41 = vector.shape_cast %38 : vector<2x16xf32> to vector<2x1x16xf32>
    tpu.vector_store %arg5[%c0_23, %c9, %c0_24], %41 {strides = array<i32>} : memref<2x22x16xf32, #tpu.memory_space<vmem>>, vector<2x1x16xf32>,
    %42 = vector.extract_strided_slice %13 {offsets = [0, 112], sizes = [2, 16], strides = [1, 1]} : vector<2x256xf32> to vector<2x16xf32>
    %c0_25 = arith.constant 0 : index
    %c10 = arith.constant 10 : index
    %c0_26 = arith.constant 0 : index
    %43 = vector.load %arg5[%c0_25, %c10, %c0_26] : memref<2x22x16xf32, #tpu.memory_space<vmem>>, vector<2x1x16xf32>
    %44 = vector.shape_cast %43 : vector<2x1x16xf32> to vector<2x16xf32>
    %45 = vector.shape_cast %42 : vector<2x16xf32> to vector<2x1x16xf32>
    tpu.vector_store %arg5[%c0_25, %c10, %c0_26], %45 {strides = array<i32>} : memref<2x22x16xf32, #tpu.memory_space<vmem>>, vector<2x1x16xf32>,
    %46 = vector.extract_strided_slice %13 {offsets = [0, 128], sizes = [2, 16], strides = [1, 1]} : vector<2x256xf32> to vector<2x16xf32>
    %c0_27 = arith.constant 0 : index
    %c11 = arith.constant 11 : index
    %c0_28 = arith.constant 0 : index
    %47 = vector.load %arg5[%c0_27, %c11, %c0_28] : memref<2x22x16xf32, #tpu.memory_space<vmem>>, vector<2x1x16xf32>
    %48 = vector.shape_cast %47 : vector<2x1x16xf32> to vector<2x16xf32>
    %49 = vector.shape_cast %46 : vector<2x16xf32> to vector<2x1x16xf32>
    tpu.vector_store %arg5[%c0_27, %c11, %c0_28], %49 {strides = array<i32>} : memref<2x22x16xf32, #tpu.memory_space<vmem>>, vector<2x1x16xf32>,
    %50 = vector.extract_strided_slice %13 {offsets = [0, 144], sizes = [2, 16], strides = [1, 1]} : vector<2x256xf32> to vector<2x16xf32>
    %c0_29 = arith.constant 0 : index
    %c12 = arith.constant 12 : index
    %c0_30 = arith.constant 0 : index
    %51 = vector.load %arg5[%c0_29, %c12, %c0_30] : memref<2x22x16xf32, #tpu.memory_space<vmem>>, vector<2x1x16xf32>
    %52 = vector.shape_cast %51 : vector<2x1x16xf32> to vector<2x16xf32>
    %53 = vector.shape_cast %50 : vector<2x16xf32> to vector<2x1x16xf32>
    tpu.vector_store %arg5[%c0_29, %c12, %c0_30], %53 {strides = array<i32>} : memref<2x22x16xf32, #tpu.memory_space<vmem>>, vector<2x1x16xf32>,
    %54 = vector.extract_strided_slice %13 {offsets = [0, 160], sizes = [2, 16], strides = [1, 1]} : vector<2x256xf32> to vector<2x16xf32>
    %c0_31 = arith.constant 0 : index
    %c13 = arith.constant 13 : index
    %c0_32 = arith.constant 0 : index
    %55 = vector.load %arg5[%c0_31, %c13, %c0_32] : memref<2x22x16xf32, #tpu.memory_space<vmem>>, vector<2x1x16xf32>
    %56 = vector.shape_cast %55 : vector<2x1x16xf32> to vector<2x16xf32>
    %57 = vector.shape_cast %54 : vector<2x16xf32> to vector<2x1x16xf32>
    tpu.vector_store %arg5[%c0_31, %c13, %c0_32], %57 {strides = array<i32>} : memref<2x22x16xf32, #tpu.memory_space<vmem>>, vector<2x1x16xf32>,
    %58 = vector.extract_strided_slice %13 {offsets = [0, 176], sizes = [2, 16], strides = [1, 1]} : vector<2x256xf32> to vector<2x16xf32>
    %c0_33 = arith.constant 0 : index
    %c14 = arith.constant 14 : index
    %c0_34 = arith.constant 0 : index
    %59 = vector.load %arg5[%c0_33, %c14, %c0_34] : memref<2x22x16xf32, #tpu.memory_space<vmem>>, vector<2x1x16xf32>
    %60 = vector.shape_cast %59 : vector<2x1x16xf32> to vector<2x16xf32>
    %61 = vector.shape_cast %58 : vector<2x16xf32> to vector<2x1x16xf32>
    tpu.vector_store %arg5[%c0_33, %c14, %c0_34], %61 {strides = array<i32>} : memref<2x22x16xf32, #tpu.memory_space<vmem>>, vector<2x1x16xf32>,
    %62 = vector.extract_strided_slice %13 {offsets = [0, 192], sizes = [2, 16], strides = [1, 1]} : vector<2x256xf32> to vector<2x16xf32>
    %c0_35 = arith.constant 0 : index
    %c15 = arith.constant 15 : index
    %c0_36 = arith.constant 0 : index
    %63 = vector.load %arg5[%c0_35, %c15, %c0_36] : memref<2x22x16xf32, #tpu.memory_space<vmem>>, vector<2x1x16xf32>
    %64 = vector.shape_cast %63 : vector<2x1x16xf32> to vector<2x16xf32>
    %65 = vector.shape_cast %62 : vector<2x16xf32> to vector<2x1x16xf32>
    tpu.vector_store %arg5[%c0_35, %c15, %c0_36], %65 {strides = array<i32>} : memref<2x22x16xf32, #tpu.memory_space<vmem>>, vector<2x1x16xf32>,
    %66 = vector.extract_strided_slice %13 {offsets = [0, 208], sizes = [2, 16], strides = [1, 1]} : vector<2x256xf32> to vector<2x16xf32>
    %c0_37 = arith.constant 0 : index
    %c16 = arith.constant 16 : index
    %c0_38 = arith.constant 0 : index
    %67 = vector.load %arg5[%c0_37, %c16, %c0_38] : memref<2x22x16xf32, #tpu.memory_space<vmem>>, vector<2x1x16xf32>
    %68 = vector.shape_cast %67 : vector<2x1x16xf32> to vector<2x16xf32>
    %69 = vector.shape_cast %66 : vector<2x16xf32> to vector<2x1x16xf32>
    tpu.vector_store %arg5[%c0_37, %c16, %c0_38], %69 {strides = array<i32>} : memref<2x22x16xf32, #tpu.memory_space<vmem>>, vector<2x1x16xf32>,
    %70 = vector.extract_strided_slice %13 {offsets = [0, 224], sizes = [2, 16], strides = [1, 1]} : vector<2x256xf32> to vector<2x16xf32>
    %c0_39 = arith.constant 0 : index
    %c17 = arith.constant 17 : index
    %c0_40 = arith.constant 0 : index
    %71 = vector.load %arg5[%c0_39, %c17, %c0_40] : memref<2x22x16xf32, #tpu.memory_space<vmem>>, vector<2x1x16xf32>
    %72 = vector.shape_cast %71 : vector<2x1x16xf32> to vector<2x16xf32>
    %73 = vector.shape_cast %70 : vector<2x16xf32> to vector<2x1x16xf32>
    tpu.vector_store %arg5[%c0_39, %c17, %c0_40], %73 {strides = array<i32>} : memref<2x22x16xf32, #tpu.memory_space<vmem>>, vector<2x1x16xf32>,
    %74 = vector.extract_strided_slice %13 {offsets = [0, 240], sizes = [2, 16], strides = [1, 1]} : vector<2x256xf32> to vector<2x16xf32>
    %c0_41 = arith.constant 0 : index
    %c18 = arith.constant 18 : index
    %c0_42 = arith.constant 0 : index
    %75 = vector.load %arg5[%c0_41, %c18, %c0_42] : memref<2x22x16xf32, #tpu.memory_space<vmem>>, vector<2x1x16xf32>
    %76 = vector.shape_cast %75 : vector<2x1x16xf32> to vector<2x16xf32>
    %77 = vector.shape_cast %74 : vector<2x16xf32> to vector<2x1x16xf32>
    tpu.vector_store %arg5[%c0_41, %c18, %c0_42], %77 {strides = array<i32>} : memref<2x22x16xf32, #tpu.memory_space<vmem>>, vector<2x1x16xf32>,
    %c0_43 = arith.constant 0 : index
    %c0_44 = arith.constant 0 : index
    %c0_45 = arith.constant 0 : index
    %78 = vector.load %arg5[%c0_43, %c0_44, %c0_45] : memref<2x22x16xf32, #tpu.memory_space<vmem>>, vector<1x16x16xf32>
    %79 = vector.shape_cast %78 : vector<1x16x16xf32> to vector<16x16xf32>
    %c0_46 = arith.constant 0 : index
    %c1_47 = arith.constant 1 : index
    %c0_48 = arith.constant 0 : index
    %80 = vector.load %arg5[%c0_46, %c1_47, %c0_48] : memref<2x22x16xf32, #tpu.memory_space<vmem>>, vector<1x16x16xf32>
    %81 = vector.shape_cast %80 : vector<1x16x16xf32> to vector<16x16xf32>
    %c0_49 = arith.constant 0 : index
    %c2 = arith.constant 2 : index
    %c0_50 = arith.constant 0 : index
    %82 = vector.load %arg5[%c0_49, %c2, %c0_50] : memref<2x22x16xf32, #tpu.memory_space<vmem>>, vector<1x16x16xf32>
    %83 = vector.shape_cast %82 : vector<1x16x16xf32> to vector<16x16xf32>
    %c0_51 = arith.constant 0 : index
    %c3_52 = arith.constant 3 : index
    %c0_53 = arith.constant 0 : index
    %84 = vector.load %arg5[%c0_51, %c3_52, %c0_53] : memref<2x22x16xf32, #tpu.memory_space<vmem>>, vector<1x16x16xf32>
    %85 = vector.shape_cast %84 : vector<1x16x16xf32> to vector<16x16xf32>
    %c0_54 = arith.constant 0 : index
    %c4_55 = arith.constant 4 : index
    %c0_56 = arith.constant 0 : index
    %86 = vector.load %arg5[%c0_54, %c4_55, %c0_56] : memref<2x22x16xf32, #tpu.memory_space<vmem>>, vector<1x16x16xf32>
    %87 = vector.shape_cast %86 : vector<1x16x16xf32> to vector<16x16xf32>
    %c0_57 = arith.constant 0 : index
    %c5_58 = arith.constant 5 : index
    %c0_59 = arith.constant 0 : index
    %88 = vector.load %arg5[%c0_57, %c5_58, %c0_59] : memref<2x22x16xf32, #tpu.memory_space<vmem>>, vector<1x16x16xf32>
    %89 = vector.shape_cast %88 : vector<1x16x16xf32> to vector<16x16xf32>
    %c0_60 = arith.constant 0 : index
    %c6_61 = arith.constant 6 : index
    %c0_62 = arith.constant 0 : index
    %90 = vector.load %arg5[%c0_60, %c6_61, %c0_62] : memref<2x22x16xf32, #tpu.memory_space<vmem>>, vector<1x16x16xf32>
    %91 = vector.shape_cast %90 : vector<1x16x16xf32> to vector<16x16xf32>
    %c1_63 = arith.constant 1 : index
    %c0_64 = arith.constant 0 : index
    %c0_65 = arith.constant 0 : index
    %92 = vector.load %arg5[%c1_63, %c0_64, %c0_65] : memref<2x22x16xf32, #tpu.memory_space<vmem>>, vector<1x16x16xf32>
    %93 = vector.shape_cast %92 : vector<1x16x16xf32> to vector<16x16xf32>
    %c1_66 = arith.constant 1 : index
    %c1_67 = arith.constant 1 : index
    %c0_68 = arith.constant 0 : index
    %94 = vector.load %arg5[%c1_66, %c1_67, %c0_68] : memref<2x22x16xf32, #tpu.memory_space<vmem>>, vector<1x16x16xf32>
    %95 = vector.shape_cast %94 : vector<1x16x16xf32> to vector<16x16xf32>
    %c1_69 = arith.constant 1 : index
    %c2_70 = arith.constant 2 : index
    %c0_71 = arith.constant 0 : index
    %96 = vector.load %arg5[%c1_69, %c2_70, %c0_71] : memref<2x22x16xf32, #tpu.memory_space<vmem>>, vector<1x16x16xf32>
    %97 = vector.shape_cast %96 : vector<1x16x16xf32> to vector<16x16xf32>
    %c1_72 = arith.constant 1 : index
    %c3_73 = arith.constant 3 : index
    %c0_74 = arith.constant 0 : index
    %98 = vector.load %arg5[%c1_72, %c3_73, %c0_74] : memref<2x22x16xf32, #tpu.memory_space<vmem>>, vector<1x16x16xf32>
    %99 = vector.shape_cast %98 : vector<1x16x16xf32> to vector<16x16xf32>
    %c1_75 = arith.constant 1 : index
    %c4_76 = arith.constant 4 : index
    %c0_77 = arith.constant 0 : index
    %100 = vector.load %arg5[%c1_75, %c4_76, %c0_77] : memref<2x22x16xf32, #tpu.memory_space<vmem>>, vector<1x16x16xf32>
    %101 = vector.shape_cast %100 : vector<1x16x16xf32> to vector<16x16xf32>
    %c1_78 = arith.constant 1 : index
    %c5_79 = arith.constant 5 : index
    %c0_80 = arith.constant 0 : index
    %102 = vector.load %arg5[%c1_78, %c5_79, %c0_80] : memref<2x22x16xf32, #tpu.memory_space<vmem>>, vector<1x16x16xf32>
    %103 = vector.shape_cast %102 : vector<1x16x16xf32> to vector<16x16xf32>
    %c1_81 = arith.constant 1 : index
    %c6_82 = arith.constant 6 : index
    %c0_83 = arith.constant 0 : index
    %104 = vector.load %arg5[%c1_81, %c6_82, %c0_83] : memref<2x22x16xf32, #tpu.memory_space<vmem>>, vector<1x16x16xf32>
    %105 = vector.shape_cast %104 : vector<1x16x16xf32> to vector<16x16xf32>
    %106 = tpu.concatenate %79, %81, %83, %85, %87, %89, %91, %93, %95, %97, %99, %101, %103, %105 in 1 : vector<16x16xf32>, vector<16x16xf32>, vector<16x16xf32>, vector<16x16xf32>, vector<16x16xf32>, vector<16x16xf32>, vector<16x16xf32>, vector<16x16xf32>, vector<16x16xf32>, vector<16x16xf32>, vector<16x16xf32>, vector<16x16xf32>, vector<16x16xf32>, vector<16x16xf32> -> vector<16x224xf32>
    %cst_84 = arith.constant dense<0.000000e+00> : vector<16x16xf32>
    %107 = tpu.matmul %106, %0, %cst_84 {dimension_numbers = #tpu.dot_dimension_numbers<[1], [0], [0], [1], [0, 0, 1, 1], [], []>} : vector<16x224xf32>, vector<224x16xf32>, vector<16x16xf32> -> vector<16x16xf32>
    %108 = vector.broadcast %1 : f32 to vector<16x16xf32>
    %109 = arith.mulf %107, %108 : vector<16x16xf32>
    %110 = vector.broadcast %2 : f32 to vector<16x16xf32>
    %111 = arith.addf %109, %110 : vector<16x16xf32>
    %cst_85 = arith.constant 0.000000e+00 : f32
    %112 = vector.broadcast %cst_85 : f32 to vector<16x16xf32>
    %113 = arith.subf %112, %111 : vector<16x16xf32>
    %114 = math.exp %113 : vector<16x16xf32>
    %cst_86 = arith.constant 1.000000e+00 : f32
    %115 = vector.broadcast %cst_86 : f32 to vector<16x16xf32>
    %116 = arith.addf %115, %114 : vector<16x16xf32>
    %117 = tpu.reciprocal %116 : vector<16x16xf32> -> vector<16x16xf32>
    %118 = vector.extract_strided_slice %117 {offsets = [0, 0], sizes = [1, 16], strides = [1, 1]} : vector<16x16xf32> to vector<1x16xf32>
    %119 = vector.extract_strided_slice %117 {offsets = [1, 0], sizes = [1, 16], strides = [1, 1]} : vector<16x16xf32> to vector<1x16xf32>
    %120 = vector.extract_strided_slice %117 {offsets = [2, 0], sizes = [1, 16], strides = [1, 1]} : vector<16x16xf32> to vector<1x16xf32>
    %121 = vector.extract_strided_slice %117 {offsets = [3, 0], sizes = [1, 16], strides = [1, 1]} : vector<16x16xf32> to vector<1x16xf32>
    %122 = vector.extract_strided_slice %117 {offsets = [4, 0], sizes = [1, 16], strides = [1, 1]} : vector<16x16xf32> to vector<1x16xf32>
    %123 = vector.extract_strided_slice %117 {offsets = [5, 0], sizes = [1, 16], strides = [1, 1]} : vector<16x16xf32> to vector<1x16xf32>
    %124 = vector.extract_strided_slice %117 {offsets = [6, 0], sizes = [1, 16], strides = [1, 1]} : vector<16x16xf32> to vector<1x16xf32>
    %125 = vector.extract_strided_slice %117 {offsets = [7, 0], sizes = [1, 16], strides = [1, 1]} : vector<16x16xf32> to vector<1x16xf32>
    %126 = vector.extract_strided_slice %117 {offsets = [8, 0], sizes = [1, 16], strides = [1, 1]} : vector<16x16xf32> to vector<1x16xf32>
    %127 = vector.extract_strided_slice %117 {offsets = [9, 0], sizes = [1, 16], strides = [1, 1]} : vector<16x16xf32> to vector<1x16xf32>
    %128 = vector.extract_strided_slice %117 {offsets = [10, 0], sizes = [1, 16], strides = [1, 1]} : vector<16x16xf32> to vector<1x16xf32>
    %129 = vector.extract_strided_slice %117 {offsets = [11, 0], sizes = [1, 16], strides = [1, 1]} : vector<16x16xf32> to vector<1x16xf32>
    %130 = vector.extract_strided_slice %117 {offsets = [12, 0], sizes = [1, 16], strides = [1, 1]} : vector<16x16xf32> to vector<1x16xf32>
    %131 = vector.extract_strided_slice %117 {offsets = [13, 0], sizes = [1, 16], strides = [1, 1]} : vector<16x16xf32> to vector<1x16xf32>
    %132 = vector.extract_strided_slice %117 {offsets = [14, 0], sizes = [1, 16], strides = [1, 1]} : vector<16x16xf32> to vector<1x16xf32>
    %133 = vector.extract_strided_slice %117 {offsets = [15, 0], sizes = [1, 16], strides = [1, 1]} : vector<16x16xf32> to vector<1x16xf32>
    %134 = tpu.concatenate %118, %119, %120, %121, %122, %123, %124, %125, %126, %127, %128, %129, %130, %131, %132, %133 in 1 : vector<1x16xf32>, vector<1x16xf32>, vector<1x16xf32>, vector<1x16xf32>, vector<1x16xf32>, vector<1x16xf32>, vector<1x16xf32>, vector<1x16xf32>, vector<1x16xf32>, vector<1x16xf32>, vector<1x16xf32>, vector<1x16xf32>, vector<1x16xf32>, vector<1x16xf32>, vector<1x16xf32>, vector<1x16xf32> -> vector<1x256xf32>
    %135 = vector.broadcast %134 : vector<1x256xf32> to vector<4x256xf32>
    %136 = arith.mulf %6, %135 : vector<4x256xf32>
    %c0_87 = arith.constant 0 : index
    %c0_88 = arith.constant 0 : index
    %c0_89 = arith.constant 0 : index
    %137 = vector.load %arg4[%c0_87, %c0_88, %c0_89] : memref<1x4x256xf32, #tpu.memory_space<vmem>>, vector<1x4x256xf32>
    %138 = vector.shape_cast %137 : vector<1x4x256xf32> to vector<4x256xf32>
    %139 = vector.shape_cast %136 : vector<4x256xf32> to vector<1x4x256xf32>
    tpu.vector_store %arg4[%c0_87, %c0_88, %c0_89], %139 {strides = array<i32>} : memref<1x4x256xf32, #tpu.memory_space<vmem>>, vector<1x4x256xf32>,
    return
  }
  func.func @transform_0(%arg0: i32) -> i32 {
    %c0_i32 = arith.constant 0 : i32
    %c0_i32_0 = arith.constant 0 : i32
    return %c0_i32 : i32
  }
  func.func @transform_1(%arg0: i32) -> (i32, i32) {
    %c0_i32 = arith.constant 0 : i32
    %c0_i32_0 = arith.constant 0 : i32
    %c0_i32_1 = arith.constant 0 : i32
    return %c0_i32, %c0_i32_0 : i32, i32
  }
  func.func @transform_2(%arg0: i32) -> (i32, i32, i32) {
    %c0_i32 = arith.constant 0 : i32
    %c0_i32_0 = arith.constant 0 : i32
    %c0_i32_1 = arith.constant 0 : i32
    return %arg0, %c0_i32, %c0_i32_0 : i32, i32, i32
  }
  func.func @transform_3(%arg0: i32) -> (i32, i32, i32) {
    %c0_i32 = arith.constant 0 : i32
    %c0_i32_0 = arith.constant 0 : i32
    %c0_i32_1 = arith.constant 0 : i32
    return %arg0, %c0_i32, %c0_i32_0 : i32, i32, i32
  }
}

</mosaic_0001>

<bundles_post_ra>
// kernel: tpu_custom_call.1
= control target key start
LH: loop header
LB: loop body
LE: loop exit
PB: predicated region body
PF: predicated region fallthrough
CT: control target
= control target key end

     0   :  { %8 = vsyncpa [#allocation5], 0  ;;  %s1385_s0 = inlined_call_operand.vmem [shape: f32[2], index: 0, kind: input, shape index: {}]   ;;  %s1386_s1 = inlined_call_operand.vmem [shape: f32[224,16], index: 1, kind: input, shape index: {}]   ;;  %s1387_s2 = inlined_call_operand.vmem [shape: f32[2,4,256], index: 2, kind: input, shape index: {}]   ;;  %s1388_s3 = inlined_call_operand.hbm [shape: f32[2,4,256], index: 3, kind: output, shape index: {}]  }
   0x1   :  { %9 = vsyncpa [#allocation4], 0 }
   0x2   :  { %11 = vsyncpa [#allocation4 + $0x1], 0  ;;  %s1061_s12 = smov 0   ;;  %s1063_s13 = smov 0  }
   0x3   :  { %s1065_s14 = smov 0   ;;  %s1067_s15 = smov 0  }
   0x4 LB: > { %s1082_s16 = sadd.s32 4294967295, %s1029_s15   ;;  %s819_s17 = sadd.s32 4294967294, %s1029_s15   ;;  %s1029_s15 = sphi %s1067_s15, %s1394_s15   ;;  %s1025_s14 = sphi %s1065_s14, %s1393_s14   ;;  %s1021_s13 = sphi %s1063_s13, %s1392_s13   ;;  %s1017_s12 = sphi %s1061_s12, %s1391_s12  }
   0x5   : > { %s1086_s18 = sadd.s32 1, %s1029_s15   ;;  %s92_s19 = sadd.s32 1, %s1025_s14 }
   0x6   : > { %s89_s20 = ssub.s32 %s1029_s15, %s1086_s18  ;;  %p102_p0 = scmp.ne.s32.totalorder %s1025_s14, %s1021_s13 }
   0x7   : > { %p90_p1 = scmp.eq.s32.totalorder %s89_s20, 0  ;;  %p103_p2 = scmp.eq.s32.totalorder %s1082_s16, 1 }
   0x8   : > { %p108_p3 = scmp.ne.s32.totalorder %s1021_s13, %s1017_s12  ;;  %p109_p4 = scmp.eq.s32.totalorder %s819_s17, 1 }
   0x9   : > { %s1097_s21 = scalar_select %p90_p1, %s1025_s14, %s92_s19  }
   0xa   : > { %p1099_p5 = por %p103_p2, %p102_p0  ;;  %p1103_p6 = por %p109_p4, %p108_p3 }
   0xb   : > { %p820_p7 = scmp.ge.s32.totalorder %s1029_s15, 1  ;;  %p116_p8 = scmp.lt.s32.totalorder %s1029_s15, 3 }
   0xc   : > { %p868_p9 = scmp.eq.s32.totalorder %s1082_s16, 0  ;;  %s128_s26 = sshll.u32 %s1385_s0, 4  ;;  %s129_s26 = int_to_ptr.vmem [resolvable:$true] %s128_s26 }
   0xd   : > { %p117_p10 = pnand %p820_p7, %p116_p8  ;;  %s1031_s27 = smov [#allocation3]  }
   0xf   : > { %p860_p11 = pneg %p117_p10  ;;  %152 = sbr.rel (%p117_p10) target bundleno = 740 (0x2e4), region = 32 }
  0x11   : > { %p861_p12 = pnand %p868_p9, %p860_p11 }
  0x13   : > { %863 = dma.vmem_to_smem (!%p861_p12), %s129_s26, 16, %s1031_s27, [#allocation5]  }
  0x14   : > { %1008 = dma.done.wait (%p868_p9), [#allocation5], 16  }
  0x15   : > { %1010 = vsyncadd (%p868_p9), [#allocation5], 4294967280 }
  0x16   : > { %159 = sfence }
  0x17   : > { %p178_p13 = scmp.lt.s32.totalorder %s1082_s16, 1  ;;  %v1032_v1 = vmov 4.0   ;;  %vm228_vm0 = vcmask 1043456   ;;  %vm271_vm2 = vcmask 1040384   ;;  %s1033_s6 = smov 96   ;;  %vm213_vm3 = vcmask 130048  }
  0x18   : > { %938 = vrcp.f32 %v1032_v1  ;;  %s1034_s7 = smov 16   ;;  %s1035_s8 = smov 32   ;;  %v1040_v50 = vmov 0.0   ;;  %vm277_vm4 = vcmask 122880   ;;  %vm216_vm5 = vcmask 128000  }
  0x19   : > { %s179_s28 = scalar_select %p178_p13, %s1082_s16, 1  ;;  %215 = vst.msk [vmem:[#allocation2 + $0x8] sm:$0xff] %vm213_vm3, %v1040_v50  ;;  %vm528_vm6 = vcmask 261120   ;;  %vm531_vm7 = vcmask 392192   ;;  %vm534_vm8 = vcmask 523264   ;;  %vm537_vm9 = vcmask 654336  }
  0x1a   : > { %s1036_s9 = smov 48   ;;  %s1037_s10 = smov 80   ;;  %214 = vst.msk [vmem:[#allocation2] sm:$0xff] %vm213_vm3, %v1040_v50  ;;  %vm540_vm10 = vcmask 785408   ;;  %vm543_vm11 = vcmask 916480  }
  0x1b   : > { %s836_s29 = sshll.u32 %s179_s28, 3  ;;  %s1038_s11 = smov 112   ;;  %218 = vst.msk [vmem:[#allocation2 + $0x18] sm:$0xff] %vm213_vm3, %v1040_v50 }
  0x1c   : > { %s182_s5 = scalar_lea.vmem %s1387_s2, %s836_s29  ;;  %s1039_s17 = smov 64   ;;  %219 = vst.msk [vmem:[#allocation2 + $0x20] sm:$0xff] %vm213_vm3, %v1040_v50 }
  0x1d   : > { %v1118_v0 = vld [vmem:[%s182_s5] sm:$0xff]  ;;  %217 = vst.msk [vmem:[#allocation2 + $0x10] sm:$0x3f] %vm216_vm5, %v1040_v50  ;;  %s211_s20 = sld [smem:[#allocation3]]  ;;  %s983_s4 = scalar_lea.hbm %s1388_s3, 16 }
  0x1e   : > { %223 = vst [vmem:[#allocation1] ss:$2 sm:$0xff] %v1118_v0  ;;  %v939_v2 = vpop.eup %938  ;;  %s828_s24 = sld [smem:[#allocation3 + $0x1]] }
  0x1f   : > { %v263_v9 = vmul.f32 4.0, %v939_v2  ;;  %vm267_vm1 = vweird.f32 %v939_v2  ;;  %220 = vst.msk [vmem:[#allocation2 + $0x28] sm:$0x3f] %vm216_vm5, %v1040_v50  ;;  %v210_v50 = vld [vmem:[%s1386_s1 + $0xd8] sm:$0xff] }
  0x20   : > { %589 = vmatpush.msra.mxu1 %v210_v50 }
  0x21   : > { %v264_v13 = vsub.f32 1.0, %v263_v9 }
  0x23   : > { %v265_v21 = vmul.f32 %v939_v2, %v264_v13 }
  0x25   : > { %v224_v3 = vld.sshfl [vmem:[#allocation1] sm:$0xff pattern:$0x75316420]  ;;  %v225_v4 = vld.sshfl [vmem:[#allocation1 + $0x8] sm:$0xff pattern:$0x75316420]  ;;  %v266_v28 = vadd.f32 %v939_v2, %v265_v21 }
  0x26   : > { %v236_v5 = vsel %vm228_vm0, %v225_v4, -inf  ;;  %243 = vst [vmem:[#allocation1] ss:$2 sm:$0xff] %v1118_v0  ;;  %v229_v6 = vsel %vm228_vm0, %v224_v3, -inf }
  0x27   : > { %v237_v7 = vrot.slane %v236_v5, 4  ;;  %v230_v8 = vrot.slane %v229_v6, 4  ;;  %v268_v35 = vsel %vm267_vm1, %v939_v2, %v266_v28 }
  0x29   : > { %v238_v10 = vmax.f32 %v236_v5, %v237_v7  ;;  %v231_v11 = vmax.f32 %v229_v6, %v230_v8 }
  0x2b   : > { %v239_v12 = vrot.slane %v238_v10, 2  ;;  %v232_v14 = vrot.slane %v231_v11, 2 }
  0x2d   : > { %v245_v15 = vld.sshfl [vmem:[#allocation1 + $0x8] sm:$0xff pattern:$0x75316420]  ;;  %v244_v16 = vld.sshfl [vmem:[#allocation1] sm:$0xff pattern:$0x75316420]  ;;  %v240_v22 = vmax.f32 %v238_v10, %v239_v12  ;;  %v233_v24 = vmax.f32 %v231_v11, %v232_v14 }
  0x2e   : > { %v255_v17 = vsel %vm228_vm0, %v245_v15, 0.0  ;;  %v248_v18 = vsel %vm228_vm0, %v244_v16, 0.0 }
  0x2f   : > { %v256_v19 = vrot.slane %v255_v17, 4  ;;  %v249_v20 = vrot.slane %v248_v18, 4  ;;  %v241_v29 = vrot.slane %v240_v22, 1  ;;  %v234_v31 = vrot.slane %v233_v24, 1 }
  0x31   : > { %v257_v23 = vadd.f32 %v256_v19, %v255_v17  ;;  %v250_v25 = vadd.f32 %v249_v20, %v248_v18  ;;  %v242_v36 = vmax.f32 %v240_v22, %v241_v29  ;;  %v235_v38 = vmax.f32 %v233_v24, %v234_v31 }
  0x33   : > { %v258_v26 = vrot.slane %v257_v23, 2  ;;  %v251_v27 = vrot.slane %v250_v25, 2 }
  0x35   : > { %v259_v30 = vadd.f32 %v258_v26, %v257_v23  ;;  %v252_v32 = vadd.f32 %v251_v27, %v250_v25 }
  0x37   : > { %v260_v33 = vrot.slane %v259_v30, 1  ;;  %v253_v34 = vrot.slane %v252_v32, 1 }
  0x39   : > { %v261_v37 = vadd.f32 %v260_v33, %v259_v30  ;;  %v254_v39 = vadd.f32 %v253_v34, %v252_v32 }
  0x3b   : > { %v270_v40 = vmul.f32 %v268_v35, %v261_v37  ;;  %v269_v41 = vmul.f32 %v268_v35, %v254_v39 }
  0x3d   : > { %v273_v42 = vsel %vm271_vm2, %v242_v36, %v270_v40  ;;  %v272_v43 = vsel %vm271_vm2, %v235_v38, %v269_v41 }
  0x3e   : > { %v343_v44 = vperm.slane %v273_v42, 0  ;;  %v280_v45 = vperm.slane %v272_v43, 0  ;;  %v275_v46 = vrot.slane %v272_v43, 1  ;;  %v339_v48 = vrot.slane %v273_v42, 1  ;;  %341 = vst.msk [vmem:[#allocation2 + $0xb] sm:$0x1] %vm277_vm4, %v273_v42 }
  0x3f   : > { %278 = vst.msk [vmem:[#allocation2 + $0x3] sm:$0x1] %vm277_vm4, %v272_v43 }
  0x40   : > { %353 = vrot.lane.b32.xlu0 %v343_v44, %s1033_s6  ;;  %330 = vrot.lane.b32.xlu1 %v280_v45, %s1034_s7  ;;  %v281_v47 = vperm.slane %v275_v46, 0  ;;  %v344_v49 = vperm.slane %v339_v48, 0  ;;  %279 = vst.msk [vmem:[#allocation2 + $0x1b] sm:$0x1] %vm277_vm4, %v275_v46  ;;  %v197_v46 = vld [vmem:[%s1386_s1 + $0x70] sm:$0xff] }
  0x41   : > { %322 = vrot.lane.b32.xlu2 %v280_v45, %s1035_s8  ;;  %342 = vst.msk [vmem:[#allocation2 + $0x23] sm:$0x1] %vm277_vm4, %v339_v48  ;;  %v195_v48 = vld [vmem:[%s1386_s1 + $0x60] sm:$0xff] }
  0x48   : > { %377 = vrot.lane.b32.xlu0 %v343_v44, %s1036_s9  ;;  %361 = vrot.lane.b32.xlu1 %v343_v44, %s1037_s10 }
  0x49   : > { %345 = vrot.lane.b32.xlu2 %v343_v44, %s1038_s11 }
  0x50   : > { %393 = vrot.lane.b32.xlu0 %v343_v44, %s1034_s7  ;;  %300 = vrot.lane.b32.xlu1 %v281_v47, %s1037_s10 }
  0x51   : > { %369 = vrot.lane.b32.xlu2 %v343_v44, %s1039_s17 }
  0x58   : > { %308 = vrot.lane.b32.xlu1 %v281_v47, %s1039_s17  ;;  %284 = vrot.lane.b32.xlu0 %v281_v47, %s1038_s11 }
  0x59   : > { %385 = vrot.lane.b32.xlu2 %v343_v44, %s1035_s8 }
  0x60   : > { %332 = vrot.lane.b32.xlu1 %v281_v47, %s1034_s7  ;;  %292 = vrot.lane.b32.xlu0 %v281_v47, %s1033_s6 }
  0x61   : > { %316 = vrot.lane.b32.xlu2 %v281_v47, %s1036_s9 }
  0x68   : > { %347 = vrot.lane.b32.xlu1 %v344_v49, %s1038_s11  ;;  %324 = vrot.lane.b32.xlu0 %v281_v47, %s1035_s8  ;;  %v196_v47 = vld [vmem:[%s1386_s1 + $0x68] sm:$0xff] }
  0x69   : > { %355 = vrot.lane.b32.xlu2 %v344_v49, %s1033_s6 }
  0x70   : > { %371 = vrot.lane.b32.xlu1 %v344_v49, %s1039_s17  ;;  %363 = vrot.lane.b32.xlu0 %v344_v49, %s1037_s10 }
  0x71   : > { %282 = vrot.lane.b32.xlu2 %v280_v45, %s1038_s11 }
  0x78   : > { %298 = vrot.lane.b32.xlu1 %v280_v45, %s1037_s10  ;;  %290 = vrot.lane.b32.xlu0 %v280_v45, %s1033_s6 }
  0x79   : > { %306 = vrot.lane.b32.xlu2 %v280_v45, %s1039_s17 }
  0x80   : > { %379 = vrot.lane.b32.xlu1 %v344_v49, %s1036_s9  ;;  %314 = vrot.lane.b32.xlu0 %v280_v45, %s1036_s9  ;;  %v198_v45 = vld [vmem:[%s1386_s1 + $0x78] sm:$0xff] }
  0x81   : > { %387 = vrot.lane.b32.xlu2 %v344_v49, %s1035_s8  ;;  %838 = vmatpush.msra.mxu2 %v198_v45 }
  0x82   : > { %562 = vmatpush.msra.mxu0 %v198_v45 }
  0x83   : > { %839 = vmatpush.msra.mxu2 %v197_v46 }
  0x84   : > { %563 = vmatpush.msra.mxu0 %v197_v46 }
  0x85   : > { %840 = vmatpush.msra.mxu2 %v196_v47 }
  0x86   : > { %564 = vmatpush.msra.mxu0 %v196_v47 }
  0x87   : > { %841 = vmatpush.msra.mxu2 %v195_v48 }
  0x88   : > { %395 = vrot.lane.b32.xlu0 %v344_v49, %s1034_s7  ;;  %565 = vmatpush.msra.mxu0 %v195_v48  ;;  %v194_v49 = vld [vmem:[%s1386_s1 + $0x58] sm:$0xff] }
  0x89   : > { %842 = vmatpush.msra.mxu2 %v194_v49 }
  0x8a   : > { %566 = vmatpush.msra.mxu0 %v194_v49 }
  0x9b   : > { %v323_v51 = vpop.permute.xlu2 %322 }
  0x9c   : > { %328 = vst.msk [vmem:[#allocation2 + $0x9] sm:$0x1] %vm277_vm4, %v323_v51  ;;  %v193_v51 = vld [vmem:[%s1386_s1 + $0x50] sm:$0xff] }
  0x9d   : > { %843 = vmatpush.msra.mxu2 %v193_v51  ;;  %567 = vmatpush.msra.mxu0 %v193_v51 }
  0xa3   : > { %v346_v52 = vpop.permute.xlu2 %345 }
  0xa4   : > { %351 = vst.msk [vmem:[#allocation2 + $0xc] sm:$0x1] %vm277_vm4, %v346_v52  ;;  %v209_v52 = vld [vmem:[%s1386_s1 + $0xd0] sm:$0xff] }
  0xa5   : > { %590 = vmatpush.msra.mxu1 %v209_v52 }
  0xab   : > { %v370_v53 = vpop.permute.xlu2 %369 }
  0xac   : > { %375 = vst.msk [vmem:[#allocation2 + $0xf] sm:$0x1] %vm277_vm4, %v370_v53  ;;  %v192_v53 = vld [vmem:[%s1386_s1 + $0x48] sm:$0xff] }
  0xad   : > { %844 = vmatpush.msra.mxu2 %v192_v53  ;;  %568 = vmatpush.msra.mxu0 %v192_v53 }
  0xb2   : > { %v354_v54 = vpop.permute.xlu0 %353  ;;  %v331_v55 = vpop.permute.xlu1 %330 }
  0xb3   : > { %359 = vst.msk [vmem:[#allocation2 + $0xd] sm:$0x1] %vm277_vm4, %v354_v54  ;;  %v386_v56 = vpop.permute.xlu2 %385  ;;  %v208_v54 = vld [vmem:[%s1386_s1 + $0xc8] sm:$0xff] }
  0xb4   : > { %336 = vst.msk [vmem:[#allocation2 + $0xa] sm:$0x1] %vm277_vm4, %v331_v55  ;;  %591 = vmatpush.msra.mxu1 %v208_v54  ;;  %v191_v55 = vld [vmem:[%s1386_s1 + $0x40] sm:$0xff] }
  0xb5   : > { %391 = vst.msk [vmem:[#allocation2 + $0x11] sm:$0x1] %vm277_vm4, %v386_v56  ;;  %v207_v56 = vld [vmem:[%s1386_s1 + $0xc0] sm:$0xff]  ;;  %845 = vmatpush.msra.mxu2 %v191_v55  ;;  %569 = vmatpush.msra.mxu0 %v191_v55 }
  0xb6   : > { %592 = vmatpush.msra.mxu1 %v207_v56 }
  0xba   : > { %v378_v57 = vpop.permute.xlu0 %377  ;;  %v362_v58 = vpop.permute.xlu1 %361 }
  0xbb   : > { %383 = vst.msk [vmem:[#allocation2 + $0x10] sm:$0x1] %vm277_vm4, %v378_v57  ;;  %v317_v59 = vpop.permute.xlu2 %316  ;;  %v190_v57 = vld [vmem:[%s1386_s1 + $0x38] sm:$0xff] }
  0xbc   : > { %367 = vst.msk [vmem:[#allocation2 + $0xe] sm:$0x1] %vm277_vm4, %v362_v58  ;;  %v206_v58 = vld [vmem:[%s1386_s1 + $0xb8] sm:$0xff]  ;;  %846 = vmatpush.msra.mxu2 %v190_v57  ;;  %570 = vmatpush.msra.mxu0 %v190_v57 }
  0xbd   : > { %321 = vst.msk [vmem:[#allocation2 + $0x20] sm:$0x1] %vm277_vm4, %v317_v59  ;;  %v189_v59 = vld [vmem:[%s1386_s1 + $0x30] sm:$0xff]  ;;  %593 = vmatpush.msra.mxu1 %v206_v58 }
  0xbe   : > { %847 = vmatpush.msra.mxu2 %v189_v59  ;;  %571 = vmatpush.msra.mxu0 %v189_v59 }
  0xc2   : > { %v394_v60 = vpop.permute.xlu0 %393  ;;  %v301_v61 = vpop.permute.xlu1 %300 }
  0xc3   : > { %399 = vst.msk [vmem:[#allocation2 + $0x12] sm:$0x1] %vm277_vm4, %v394_v60  ;;  %v356_v62 = vpop.permute.xlu2 %355  ;;  %v406_v17 = vld [vmem:[#allocation2 + $0xa] sm:$0xff] }
  0xc4   : > { %305 = vst.msk [vmem:[#allocation2 + $0x1e] sm:$0x1] %vm277_vm4, %v301_v61  ;;  %v404_v18 = vld [vmem:[#allocation2 + $0x9] sm:$0xff]  ;;  %v188_v61 = vld [vmem:[%s1386_s1 + $0x28] sm:$0xff] }
  0xc5   : > { %360 = vst.msk [vmem:[#allocation2 + $0x25] sm:$0x1] %vm277_vm4, %v356_v62  ;;  %v205_v60 = vld [vmem:[%s1386_s1 + $0xb0] sm:$0xff]  ;;  %v204_v62 = vld [vmem:[%s1386_s1 + $0xa8] sm:$0xff]  ;;  %848 = vmatpush.msra.mxu2 %v188_v61  ;;  %572 = vmatpush.msra.mxu0 %v188_v61 }
  0xc6   : > { %594 = vmatpush.msra.mxu1 %v205_v60 }
  0xc8   : > { %595 = vmatpush.msra.mxu1 %v204_v62 }
  0xca   : > { %v309_v63 = vpop.permute.xlu1 %308  ;;  %v285_v1 = vpop.permute.xlu0 %284  ;;  %v408_v16 = vld [vmem:[#allocation2 + $0xb] sm:$0xff] }
  0xcb   : > { %313 = vst.msk [vmem:[#allocation2 + $0x1f] sm:$0x1] %vm277_vm4, %v309_v63  ;;  %v283_v2 = vpop.permute.xlu2 %282  ;;  %v412_v27 = vld [vmem:[#allocation2 + $0xd] sm:$0xff]  ;;  %v187_v63 = vld [vmem:[%s1386_s1 + $0x20] sm:$0xff] }
  0xcc   : > { %289 = vst.msk [vmem:[#allocation2 + $0x1c] sm:$0x1] %vm277_vm4, %v285_v1  ;;  %v410_v29 = vld [vmem:[#allocation2 + $0xc] sm:$0xff]  ;;  %v203_v1 = vld [vmem:[%s1386_s1 + $0xa0] sm:$0xff]  ;;  %849 = vmatpush.msra.mxu2 %v187_v63  ;;  %573 = vmatpush.msra.mxu0 %v187_v63 }
  0xcd   : > { %288 = vst.msk [vmem:[#allocation2 + $0x4] sm:$0x1] %vm277_vm4, %v283_v2  ;;  %v414_v30 = vld [vmem:[#allocation2 + $0xe] sm:$0xff]  ;;  %596 = vmatpush.msra.mxu1 %v203_v1 }
  0xce   : > { %v186_v2 = vld [vmem:[%s1386_s1 + $0x18] sm:$0xff] }
  0xcf   : > { %850 = vmatpush.msra.mxu2 %v186_v2  ;;  %574 = vmatpush.msra.mxu0 %v186_v2 }
  0xd2   : > { %v333_v3 = vpop.permute.xlu1 %332  ;;  %v293_v4 = vpop.permute.xlu0 %292 }
  0xd3   : > { %337 = vst.msk [vmem:[#allocation2 + $0x22] sm:$0x1] %vm277_vm4, %v333_v3  ;;  %v307_v5 = vpop.permute.xlu2 %306  ;;  %v202_v3 = vld [vmem:[%s1386_s1 + $0x98] sm:$0xff] }
  0xd4   : > { %297 = vst.msk [vmem:[#allocation2 + $0x1d] sm:$0x1] %vm277_vm4, %v293_v4  ;;  %v185_v4 = vld [vmem:[%s1386_s1 + $0x10] sm:$0xff]  ;;  %597 = vmatpush.msra.mxu1 %v202_v3 }
  0xd5   : > { %312 = vst.msk [vmem:[#allocation2 + $0x7] sm:$0x1] %vm277_vm4, %v307_v5  ;;  %v201_v5 = vld [vmem:[%s1386_s1 + $0x90] sm:$0xff]  ;;  %851 = vmatpush.msra.mxu2 %v185_v4  ;;  %575 = vmatpush.msra.mxu0 %v185_v4 }
  0xd6   : > { %598 = vmatpush.msra.mxu1 %v201_v5 }
  0xda   : > { %v348_v6 = vpop.permute.xlu1 %347  ;;  %v325_v7 = vpop.permute.xlu0 %324 }
  0xdb   : > { %352 = vst.msk [vmem:[#allocation2 + $0x24] sm:$0x1] %vm277_vm4, %v348_v6  ;;  %v388_v8 = vpop.permute.xlu2 %387  ;;  %v416_v44 = vld [vmem:[#allocation2 + $0x18] sm:$0xff]  ;;  %v184_v6 = vld [vmem:[%s1386_s1 + $0x8] sm:$0xff] }
  0xdc   : > { %329 = vst.msk [vmem:[#allocation2 + $0x21] sm:$0x1] %vm277_vm4, %v325_v7  ;;  %v200_v7 = vld [vmem:[%s1386_s1 + $0x88] sm:$0xff]  ;;  %852 = vmatpush.msra.mxu2 %v184_v6  ;;  %576 = vmatpush.msra.mxu0 %v184_v6 }
  0xdd   : > { %392 = vst.msk [vmem:[#allocation2 + $0x29] sm:$0x1] %vm277_vm4, %v388_v8  ;;  %599 = vmatpush.msra.mxu1 %v200_v7  ;;  %v608_v7 = vstv %s211_s20 }
  0xe2   : > { %v372_v9 = vpop.permute.xlu1 %371  ;;  %v364_v10 = vpop.permute.xlu0 %363 }
  0xe3   : > { %376 = vst.msk [vmem:[#allocation2 + $0x27] sm:$0x1] %vm277_vm4, %v372_v9  ;;  %v424_v32 = vld [vmem:[#allocation2 + $0x1c] sm:$0xff] }
  0xe4   : > { %368 = vst.msk [vmem:[#allocation2 + $0x26] sm:$0x1] %vm277_vm4, %v364_v10  ;;  %v420_v33 = vld [vmem:[#allocation2 + $0x1a] sm:$0xff] }
  0xe5   : > { %v422_v34 = vld [vmem:[#allocation2 + $0x1b] sm:$0xff] }
  0xe6   : > { %v426_v36 = vld [vmem:[#allocation2 + $0x1d] sm:$0xff] }
  0xe7   : > { %v428_v37 = vld [vmem:[#allocation2 + $0x1e] sm:$0xff] }
  0xe8   : > { %v183_v9 = vld [vmem:[%s1386_s1] sm:$0xff] }
  0xe9   : > { %v199_v10 = vld [vmem:[%s1386_s1 + $0x80] sm:$0xff]  ;;  %853 = vmatpush.msra.mxu2 %v183_v9  ;;  %577 = vmatpush.msra.mxu0 %v183_v9  ;;  %v611_v9 = vstv %s828_s24 }
  0xea   : > { %v299_v11 = vpop.permute.xlu1 %298  ;;  %v291_v12 = vpop.permute.xlu0 %290  ;;  %600 = vmatpush.msra.mxu1 %v199_v10 }
  0xeb   : > { %304 = vst.msk [vmem:[#allocation2 + $0x6] sm:$0x1] %vm277_vm4, %v299_v11  ;;  %v417_v35 = vld [vmem:[#allocation2 + $0x20] sm:$0xff] }
  0xec   : > { %296 = vst.msk [vmem:[#allocation2 + $0x5] sm:$0x1] %vm277_vm4, %v291_v12 }
  0xf2   : > { %v380_v13 = vpop.permute.xlu1 %379  ;;  %v315_v14 = vpop.permute.xlu0 %314 }
  0xf3   : > { %384 = vst.msk [vmem:[#allocation2 + $0x28] sm:$0x1] %vm277_vm4, %v380_v13  ;;  %v401_v47 = vld [vmem:[#allocation2] sm:$0xff] }
  0xf4   : > { %320 = vst.msk [vmem:[#allocation2 + $0x8] sm:$0x1] %vm277_vm4, %v315_v14 }
  0xfa   : > { %v396_v15 = vpop.permute.xlu0 %395  ;;  %v421_v40 = vld [vmem:[#allocation2 + $0x22] sm:$0xff] }
  0xfb   : > { %400 = vst.msk [vmem:[#allocation2 + $0x2a] sm:$0x1] %vm277_vm4, %v396_v15  ;;  %v407_v19 = vld [vmem:[#allocation2 + $0x3] sm:$0xff] }
  0xfc   : > { %v405_v20 = vld [vmem:[#allocation2 + $0x2] sm:$0xff]  ;;  %v923_v22 = vpack.i.bf16 %v407_v19, %v408_v16 }
  0xfd   : > { %v403_v21 = vld [vmem:[#allocation2 + $0x1] sm:$0xff]  ;;  %v918_v23 = vpack.i.bf16 %v405_v20, %v406_v17 }
  0xfe   : > { %v913_v24 = vpack.i.bf16 %v403_v21, %v404_v18  ;;  %924 = vrot.lane.b32.xlu2 %v923_v22, %s1036_s9  ;;  %v411_v25 = vld [vmem:[#allocation2 + $0x5] sm:$0xff] }
  0xff   : > { %919 = vrot.lane.b32.xlu0 %v918_v23, %s1035_s8  ;;  %v409_v26 = vld [vmem:[#allocation2 + $0x4] sm:$0xff]  ;;  %v933_v28 = vpack.i.bf16 %v411_v25, %v412_v27  ;;  %v418_v25 = vld [vmem:[#allocation2 + $0x19] sm:$0xff] }
 0x100   : > { %914 = vrot.lane.b32.xlu1 %v913_v24, %s1034_s7  ;;  %v928_v31 = vpack.i.bf16 %v409_v26, %v410_v29  ;;  %v413_v41 = vld [vmem:[#allocation2 + $0x6] sm:$0xff] }
 0x101   : > { %v402_v17 = vld [vmem:[#allocation2 + $0x8] sm:$0xff] }
 0x102   : > { %v425_v38 = vld [vmem:[#allocation2 + $0x24] sm:$0xff] }
 0x103   : > { %v423_v39 = vld [vmem:[#allocation2 + $0x23] sm:$0xff] }
 0x104   : > { %v429_v42 = vld [vmem:[#allocation2 + $0x26] sm:$0xff] }
 0x105   : > { %v427_v43 = vld [vmem:[#allocation2 + $0x25] sm:$0xff] }
 0x106   : > { %474 = vrot.lane.b32.xlu2 %v414_v30, %s1033_s6 }
 0x107   : > { %934 = vrot.lane.b32.xlu0 %v933_v28, %s1037_s10 }
 0x108   : > { %929 = vrot.lane.b32.xlu1 %v928_v31, %s1039_s17 }
 0x10e   : > { %488 = vrot.lane.b32.xlu2 %v420_v33, %s1034_s7 }
 0x10f   : > { %504 = vrot.lane.b32.xlu0 %v424_v32, %s1036_s9 }
 0x110   : > { %496 = vrot.lane.b32.xlu1 %v422_v34, %s1035_s8 }
 0x116   : > { %512 = vrot.lane.b32.xlu2 %v426_v36, %s1039_s17 }
 0x117   : > { %482 = vrot.lane.b32.xlu0 %v417_v35, %s1038_s11 }
 0x118   : > { %520 = vrot.lane.b32.xlu1 %v428_v37, %s1037_s10 }
 0x11e   : > { %498 = vrot.lane.b32.xlu2 %v423_v39, %s1035_s8 }
 0x11f   : > { %506 = vrot.lane.b32.xlu0 %v425_v38, %s1036_s9 }
 0x120   : > { %490 = vrot.lane.b32.xlu1 %v421_v40, %s1034_s7 }
 0x126   : > { %522 = vrot.lane.b32.xlu2 %v429_v42, %s1037_s10 }
 0x127   : > { %472 = vrot.lane.b32.xlu0 %v413_v41, %s1033_s6 }
 0x128   : > { %514 = vrot.lane.b32.xlu1 %v427_v43, %s1039_s17 }
 0x130   : > { %480 = vrot.lane.b32.xlu1 %v416_v44, %s1038_s11  ;;  %v419_v44 = vld [vmem:[#allocation2 + $0x21] sm:$0xff] }
 0x158   : > { %v1287_v8 = vpop.permute.xlu2 %924 }
 0x159   : > { %v926_v23 = vunpack.i.l.bf16 %v1287_v8  ;;  %v927_v55 = vunpack.i.h.bf16 %v1287_v8 }
 0x160   : > { %v475_v13 = vpop.permute.xlu2 %474 }
 0x168   : > { %v489_v20 = vpop.permute.xlu2 %488 }
 0x169   : > { %v546_v29 = vsel %vm213_vm3, %v418_v25, %v489_v20 }
 0x170   : > { %v513_v33 = vpop.permute.xlu2 %512 }
 0x171   : > { %v920_v11 = vpop.permute.xlu0 %919 }
 0x172   : > { %v915_v12 = vpop.permute.xlu1 %914  ;;  %v921_v18 = vunpack.i.l.bf16 %v920_v11  ;;  %v922_v48 = vunpack.i.h.bf16 %v920_v11 }
 0x173   : > { %v916_v14 = vunpack.i.l.bf16 %v915_v12  ;;  %v917_v43 = vunpack.i.h.bf16 %v915_v12 }
 0x175   : > { %v527_v19 = vsel %vm213_vm3, %v402_v17, %v916_v14  ;;  %v526_v49 = vsel %vm213_vm3, %v401_v47, %v917_v43 }
 0x176   : > { %v530_v21 = vsel %vm528_vm6, %v527_v19, %v921_v18  ;;  %v529_v51 = vsel %vm528_vm6, %v526_v49, %v922_v48 }
 0x177   : > { %v533_v26 = vsel %vm531_vm7, %v530_v21, %v926_v23  ;;  %v532_v60 = vsel %vm531_vm7, %v529_v51, %v927_v55 }
 0x178   : > { %v499_v41 = vpop.permute.xlu2 %498 }
 0x179   : > { %v935_v15 = vpop.permute.xlu0 %934 }
 0x17a   : > { %v930_v16 = vpop.permute.xlu1 %929  ;;  %v936_v27 = vunpack.i.l.bf16 %v935_v15  ;;  %v937_v59 = vunpack.i.h.bf16 %v935_v15 }
 0x17b   : > { %v931_v22 = vunpack.i.l.bf16 %v930_v16  ;;  %v932_v52 = vunpack.i.h.bf16 %v930_v16 }
 0x17d   : > { %v536_v30 = vsel %vm534_vm8, %v533_v26, %v931_v22  ;;  %v535_v61 = vsel %vm534_vm8, %v532_v60, %v932_v52 }
 0x17e   : > { %v539_v32 = vsel %vm537_vm9, %v536_v30, %v936_v27  ;;  %v538_v63 = vsel %vm537_vm9, %v535_v61, %v937_v59 }
 0x17f   : > { %v542_v36 = vsel %vm540_vm10, %v539_v32, %v475_v13 }
 0x180   : > { %v523_v56 = vpop.permute.xlu2 %522 }
 0x181   : > { %v505_v24 = vpop.permute.xlu0 %504 }
 0x182   : > { %v497_v28 = vpop.permute.xlu1 %496 }
 0x183   : > { %v548_v31 = vsel %vm528_vm6, %v546_v29, %v497_v28 }
 0x184   : > { %v550_v34 = vsel %vm531_vm7, %v548_v31, %v505_v24 }
 0x185   : > { %v552_v39 = vsel %vm534_vm8, %v550_v34, %v513_v33 }
 0x189   : > { %v483_v35 = vpop.permute.xlu0 %482 }
 0x18a   : > { %v521_v37 = vpop.permute.xlu1 %520  ;;  %v545_v38 = vsel %vm543_vm11, %v542_v36, %v483_v35 }
 0x18b   : > { %581 = vmatmul.f32.vlgmr.msra.gmra.mxu2 %v545_v38  ;;  %v554_v40 = vsel %vm537_vm9, %v552_v39, %v521_v37 }
 0x18c   : > { %829 = vmatmul.msk.f32.vlgmr.msra.gmra.mxu1 %vm540_vm10, %v554_v40 }
 0x191   : > { %v507_v46 = vpop.permute.xlu0 %506 }
 0x192   : > { %v491_v42 = vpop.permute.xlu1 %490 }
 0x193   : > { %v547_v45 = vsel %vm213_vm3, %v419_v44, %v491_v42 }
 0x194   : > { %v549_v50 = vsel %vm528_vm6, %v547_v45, %v499_v41 }
 0x195   : > { %v551_v54 = vsel %vm531_vm7, %v549_v50, %v507_v46 }
 0x199   : > { %v473_v62 = vpop.permute.xlu0 %472 }
 0x19a   : > { %v515_v53 = vpop.permute.xlu1 %514  ;;  %v541_v1 = vsel %vm540_vm10, %v538_v63, %v473_v62 }
 0x19b   : > { %v553_v57 = vsel %vm534_vm8, %v551_v54, %v515_v53 }
 0x19c   : > { %v555_v58 = vsel %vm537_vm9, %v553_v57, %v523_v56 }
 0x19d   : > { %830 = vmatmul.msk.f32.gmra.mxu1 %vm540_vm10, %v555_v58 }
 0x1a2   : > { %v481_v2 = vpop.permute.xlu1 %480 }
 0x1a3   : > { %v544_v3 = vsel %vm543_vm11, %v541_v1, %v481_v2 }
 0x1a4   : > { %578 = vmatmul.f32.vlgmr.msra.gmra.mxu0 %v544_v3 }
 0x209   : > { %v602_v4 = vpop.f32.mrf.mxu1 }
 0x20e   : > { %v582_v5 = vpop.f32.mrf.mxu2 }
 0x21a   : > { %v605_v6 = vpop.f32.mrf.mxu1 }
 0x21b   : > { %v606_v8 = vadd.f32 %v605_v6, %v582_v5 }
 0x21d   : > { %v610_v10 = vmul.f32 %v608_v7, %v606_v8 }
 0x21f   : > { %v613_v11 = vadd.f32 %v611_v9, %v610_v10 }
 0x221   : > { %v615_v12 = vsub.f32 0.0, %v613_v11  ;;  %v579_v13 = vpop.f32.mrf.mxu0 }
 0x222   : > { %v603_v14 = vadd.f32 %v602_v4, %v579_v13 }
 0x223   : > { %v618_v15 = vmul.f32 1.442695, %v615_v12 }
 0x224   : > { %v609_v16 = vmul.f32 %v608_v7, %v603_v14 }
 0x225   : > { %940 = vpow2.f32 %v618_v15 }
 0x226   : > { %v612_v17 = vadd.f32 %v611_v9, %v609_v16 }
 0x228   : > { %v614_v18 = vsub.f32 0.0, %v612_v17 }
 0x22a   : > { %v616_v19 = vmul.f32 1.442695, %v614_v18 }
 0x22b   : > { %v941_v20 = vpop.eup %940 }
 0x22c   : > { %v621_v21 = vadd.f32 1.0, %v941_v20  ;;  %942 = vpow2.f32 %v616_v19 }
 0x22e   : > { %944 = vrcp.f32 %v621_v21  ;;  %vm641_vm2 = vweird.f32 %v621_v21  ;;  %v647_v38 = vand.u32 2147483648, %v621_v21  ;;  %v645_v40 = vand.u32 2147483647, %v621_v21 }
 0x230   : > { %v648_v45 = vor.u32 1.1754944e-38, %v647_v38  ;;  %vm646_vm5 = vcmp.eq.f32.partialorder %v645_v40, 8.507059e+37 }
 0x232   : > { %v943_v22 = vpop.eup %942 }
 0x233   : > { %v620_v23 = vadd.f32 1.0, %v943_v22 }
 0x234   : > { %v945_v24 = vpop.eup %944 }
 0x235   : > { %946 = vrcp.f32 %v620_v23  ;;  %v637_v25 = vmul.f32 %v945_v24, %v621_v21  ;;  %v633_v30 = vand.u32 2147483648, %v620_v23  ;;  %v631_v33 = vand.u32 2147483647, %v620_v23 }
 0x236   : > { %vm627_vm13 = vweird.f32 %v620_v23  ;;  %vm642_vm15 = vweird.f32 %v945_v24 }
 0x237   : > { %v638_v27 = vsub.f32 1.0, %v637_v25  ;;  %v634_v35 = vor.u32 1.1754944e-38, %v633_v30  ;;  %vm632_vm1 = vcmp.eq.f32.partialorder %v631_v33, 8.507059e+37  ;;  %vm643_vm4 = vmor %vm641_vm2, %vm642_vm15 }
 0x239   : > { %v639_v31 = vmul.f32 %v945_v24, %v638_v27 }
 0x23b   : > { %v947_v26 = vpop.eup %946  ;;  %v640_v36 = vadd.f32 %v945_v24, %v639_v31 }
 0x23c   : > { %v623_v28 = vmul.f32 %v947_v26, %v620_v23  ;;  %vm628_vm12 = vweird.f32 %v947_v26 }
 0x23d   : > { %vm629_vm14 = vmor %vm627_vm13, %vm628_vm12  ;;  %v644_v44 = vsel %vm643_vm4, %v945_v24, %v640_v36 }
 0x23e   : > { %v624_v29 = vsub.f32 1.0, %v623_v28  ;;  %v649_v46 = vsel %vm646_vm5, %v648_v45, %v644_v44 }
 0x23f   : > { %v680_v47 = vrot.slane %v649_v46, 1  ;;  %v688_v50 = vrot.slane %v649_v46, 3  ;;  %v684_v51 = vrot.slane %v649_v46, 2  ;;  %v692_v52 = vrot.slane %v649_v46, 4 }
 0x240   : > { %v625_v32 = vmul.f32 %v947_v26, %v624_v29  ;;  %v700_v53 = vrot.slane %v649_v46, 6  ;;  %v696_v54 = vrot.slane %v649_v46, 5  ;;  %v704_v55 = vrot.slane %v649_v46, 7 }
 0x242   : > { %v626_v34 = vadd.f32 %v947_v26, %v625_v32 }
 0x244   : > { %v630_v37 = vsel %vm629_vm14, %v947_v26, %v626_v34 }
 0x245   : > { %v635_v39 = vsel %vm632_vm1, %v634_v35, %v630_v37 }
 0x246   : > { %v659_v41 = vrot.slane %v635_v39, 3  ;;  %v655_v42 = vrot.slane %v635_v39, 2  ;;  %v651_v43 = vrot.slane %v635_v39, 1  ;;  %v667_v48 = vrot.slane %v635_v39, 5 }
 0x247   : > { %v663_v49 = vrot.slane %v635_v39, 4  ;;  %v671_v56 = vrot.slane %v635_v39, 6  ;;  %v675_v57 = vrot.slane %v635_v39, 7 }
 0x248   : > { %660 = vrot.lane.b32.xlu2 %v659_v41, %s1036_s9  ;;  %656 = vrot.lane.b32.xlu0 %v655_v42, %s1035_s8 }
 0x249   : > { %652 = vrot.lane.b32.xlu1 %v651_v43, %s1034_s7 }
 0x250   : > { %681 = vrot.lane.b32.xlu2 %v680_v47, %s1034_s7  ;;  %668 = vrot.lane.b32.xlu0 %v667_v48, %s1037_s10 }
 0x251   : > { %664 = vrot.lane.b32.xlu1 %v663_v49, %s1039_s17 }
 0x258   : > { %689 = vrot.lane.b32.xlu2 %v688_v50, %s1036_s9  ;;  %685 = vrot.lane.b32.xlu0 %v684_v51, %s1035_s8  ;;  %s837_s8 = sshll.u32 %s1082_s16, 3 }
 0x259   : > { %693 = vrot.lane.b32.xlu1 %v692_v52, %s1039_s17 }
 0x260   : > { %701 = vrot.lane.b32.xlu2 %v700_v53, %s1033_s6  ;;  %697 = vrot.lane.b32.xlu0 %v696_v54, %s1037_s10 }
 0x261   : > { %705 = vrot.lane.b32.xlu1 %v704_v55, %s1038_s11 }
 0x268   : > { %672 = vrot.lane.b32.xlu2 %v671_v56, %s1033_s6  ;;  %676 = vrot.lane.b32.xlu0 %v675_v57, %s1038_s11  ;;  %s175_s6 = sand.u32 1, %s1021_s13   ;;  %s743_s11 = scalar_lea.hbm %s1388_s3, %s837_s8 }
 0x269   : > { %s825_s7 = sshll.u32 %s175_s6, 3  ;;  %s747_s26 = sshll.u32 %s743_s11, 4  ;;  %s748_s26 = int_to_ptr.hbm [resolvable:$true] %s747_s26 }
 0x26a   : > { %s177_s17 = scalar_lea.vmem [#allocation6], %s825_s7  ;;  %s732_s16 = scalar_lea.sflag [#allocation4], %s175_s6 }
 0x26b   : > { %s745_s25 = sshll.u32 %s177_s17, 4  ;;  %s977_s27 = sshra.s32 %s748_s26, 4  ;;  %s746_s25 = int_to_ptr.vmem [resolvable:$true] %s745_s25  ;;  %s978_s27 = int_to_ptr.hbm [resolvable:$true] %s977_s27 }
 0x26c   : > { %s979_s28 = scalar_lea.hbm %s978_s27, 8  ;;  %p984_p3 = scmp.lt.s32.totalorder %s978_s27, %s1388_s3 }
 0x26d   : > { %p980_p0 = scmp.ne.s32.totalorder %s978_s27, %s979_s28  ;;  %p985_p4 = scmp.lt.s32.totalorder %s983_s4, %s979_s28 }
 0x26f   : > { %p981_p1 = pnand %p980_p0, %p1099_p5  ;;  %p986_p7 = por %p985_p4, %p984_p3 }
 0x271   : > { %p982_p2 = pneg %p981_p1 }
 0x273   : > { %p987_p8 = pnand %p986_p7, %p982_p2 }
 0x2a2   : > { %v661_v58 = vpop.permute.xlu2 %660 }
 0x2aa   : > { %v682_v60 = vpop.permute.xlu2 %681 }
 0x2ab   : > { %v715_v3 = vsel %vm213_vm3, %v649_v46, %v682_v60 }
 0x2b2   : > { %v690_v1 = vpop.permute.xlu2 %689 }
 0x2ba   : > { %v657_v59 = vpop.permute.xlu0 %656  ;;  %v702_v7 = vpop.permute.xlu2 %701 }
 0x2bb   : > { %v653_v61 = vpop.permute.xlu1 %652 }
 0x2bc   : > { %v708_v6 = vsel %vm213_vm3, %v635_v39, %v653_v61 }
 0x2bd   : > { %v709_v9 = vsel %vm528_vm6, %v708_v6, %v657_v59 }
 0x2be   : > { %v710_v12 = vsel %vm531_vm7, %v709_v9, %v661_v58 }
 0x2c2   : > { %v669_v62 = vpop.permute.xlu0 %668  ;;  %v673_v20 = vpop.permute.xlu2 %672 }
 0x2c3   : > { %v665_v63 = vpop.permute.xlu1 %664 }
 0x2c4   : > { %v711_v14 = vsel %vm534_vm8, %v710_v12, %v665_v63 }
 0x2c5   : > { %v712_v18 = vsel %vm537_vm9, %v711_v14, %v669_v62 }
 0x2c6   : > { %v713_v22 = vsel %vm540_vm10, %v712_v18, %v673_v20 }
 0x2ca   : > { %v686_v2 = vpop.permute.xlu0 %685 }
 0x2cb   : > { %v694_v4 = vpop.permute.xlu1 %693  ;;  %v716_v5 = vsel %vm528_vm6, %v715_v3, %v686_v2 }
 0x2cc   : > { %v717_v8 = vsel %vm531_vm7, %v716_v5, %v690_v1 }
 0x2cd   : > { %v718_v10 = vsel %vm534_vm8, %v717_v8, %v694_v4 }
 0x2d2   : > { %v698_v11 = vpop.permute.xlu0 %697 }
 0x2d3   : > { %v719_v13 = vsel %vm537_vm9, %v718_v10, %v698_v11  ;;  %v706_v16 = vpop.permute.xlu1 %705 }
 0x2d4   : > { %v720_v15 = vsel %vm540_vm10, %v719_v13, %v702_v7 }
 0x2d5   : > { %v721_v17 = vsel %vm543_vm11, %v720_v15, %v706_v16 }
 0x2d6   : > { %v723_v19 = vperm.slane %v721_v17, 0 }
 0x2d8   : > { %v726_v24 = vrot.slane %v723_v19, 4 }
 0x2da   : > { %v677_v21 = vpop.permute.xlu0 %676 }
 0x2db   : > { %v714_v23 = vsel %vm543_vm11, %v713_v22, %v677_v21 }
 0x2dc   : > { %v722_v25 = vperm.slane %v714_v23, 0 }
 0x2de   : > { %v727_v26 = vsel %vm228_vm0, %v722_v25, %v726_v24 }
 0x2df   : > { %v729_v27 = vmul.f32 %v727_v26, %v1118_v0 }
 0x2e1   : > { %730 = vst [vmem:[%s177_s17] sm:$0xff] %v729_v27 }
 0x2e2   : > { %990 = shalt.err (!%p987_p8)
}
 0x2e3   : > { %858 = dma.vmem_to_hbm [thread:$0]  (%p1099_p5), %s746_s25, 128, %s748_s26, %s732_s16  }
 0x2e4 PF: > { %p870_p9 = scmp.ge.s32.totalorder %s1029_s15, 2  ;;  %s759_s20 = sand.u32 1, %s1017_s12  }
 0x2e5   : > { %s760_s24 = scalar_lea.sflag [#allocation4], %s759_s20 }
 0x2e6   : > { %p865_p10 = pnand %p870_p9, %p1103_p6 }
 0x2e8   : > { %p866_p11 = pneg %p865_p10 }
 0x2ea   : > { %1012 = dma.done.wait (%p866_p11), %s760_s24, 128  }
 0x2eb   : > { %1014 = vsyncadd (%p866_p11), %s760_s24, 4294967168  ;;  %p14_p12 = scmp.ge.s32.totalorder %s1086_s18, 4   ;;  %s1391_s12 = smov %s1021_s13 }
 0x2ec   : > { %s1392_s13 = smov %s1025_s14  ;;  %s1393_s14 = smov %s1097_s21 }
 0x2ed   : > { %s1394_s15 = smov %s1086_s18  ;;  %16 = sbr.rel (!%p14_p12) target bundleno = 4 (0x4), region = 73 }
 0x2f2   :  { %766 = vsyncpa [#allocation4], 1 }
 0x2f3   :  { %768 = vsyncpa [#allocation4 + $0x1], 1 }
 0x2f4   :  { %769 = vsyncpa [#allocation5], 1 }
 0x2f5   :  { %771 = vsyncpa [#allocation5 + $0x1], 1 }

</bundles_post_ra>
